<compile_context>
chip_gen: v7x
topology: tpu7x:2x2x1
jax: 0.10.0
libtpu: 0.0.40
codegen_flags: <defaults>
</compile_context>

<pallas_src>
import functools

import jax
import jax.numpy as jnp
from jax.experimental import pallas as pl
from jax.experimental.pallas import tpu as pltpu


# ---------------------------------------------------------------------------
# Kernel 1: RMSNorm + fused QKV projection (runs exactly once per pixel tile).
# ---------------------------------------------------------------------------
def qkv_proj_kernel(x_ref, g_ref, wqkv_ref, q_ref, k_ref, v_ref, *,
                    heads, dim_head, n_valid, tile):
    # x_ref   : (C, TN)  channels on sublanes, pixels on lanes
    # g_ref   : (C, 1)   rmsnorm gain, pre-multiplied by sqrt(C)
    # wqkv_ref: (C, 3*hidden) bf16, Q columns pre-scaled by dim_head**-0.5
    # q_ref/k_ref : (heads, dim_head, TN) bf16
    # v_ref       : (heads, dim_head + 1, TN) bf16 (last row = validity mask)
    hidden = heads * dim_head
    tn = x_ref.shape[-1]

    x = x_ref[...].astype(jnp.float32)
    ssq = jnp.sum(x * x, axis=0, keepdims=True)                     # (1, TN)
    inv = jax.lax.rsqrt(jnp.maximum(ssq, 1e-24))                    # 1/max(||x||,1e-12)
    xn = (x * inv * g_ref[...]).astype(jnp.bfloat16)                # (C, TN)

    qkv = jax.lax.dot_general(wqkv_ref[...], xn, (((0,), (0,)), ((), ())),
                              preferred_element_type=jnp.float32)   # (3*hidden, TN)

    q = qkv[0:hidden].astype(jnp.bfloat16).reshape(heads, dim_head, tn)
    k = qkv[hidden:2 * hidden].astype(jnp.bfloat16).reshape(heads, dim_head, tn)
    v = qkv[2 * hidden:3 * hidden].astype(jnp.bfloat16).reshape(heads, dim_head, tn)

    q_ref[...] = q
    k_ref[...] = k

    # Validity row: 1 for real pixels, 0 for padding.  Appending it to V makes
    # the PV matmul also produce the softmax row-sum, masked to valid keys.
    col = pl.program_id(1) * tile + jax.lax.broadcasted_iota(jnp.int32, (1, 1, tn), 2)
    valid = (col < n_valid).astype(jnp.bfloat16)                    # (1, 1, TN)
    ones_row = jnp.broadcast_to(valid, (heads, 1, tn))
    v_ref[...] = jnp.concatenate([v, ones_row], axis=1)             # (h, d+1, TN)


# ---------------------------------------------------------------------------
# Kernel 2: flash-style attention + fused to_out projection.
# ---------------------------------------------------------------------------
def attn_kernel(q_ref, k_ref, v_ref, wout_ref, bout_ref, o_ref,
                m_scr, acc_scr, *, heads, dim_head, exp_dtype):
    # q_ref : (heads, dim_head, TQ)      bf16 (attention scale folded in)
    # k_ref : (heads, dim_head, TK)      bf16
    # v_ref : (heads, dim_head + 1, TK)  bf16 (last row = ones/validity)
    # wout_ref: (hidden, C) bf16 ; bout_ref: (C, 1) f32 ; o_ref: (C, TQ)
    # m_scr : (heads, 1, TQ) f32 running max
    # acc_scr: (heads, dim_head + 1, TQ) f32 (rows 0..d-1 = PV acc, row d = l)
    ki = pl.program_id(2)
    nk = pl.num_programs(2)

    @pl.when(ki == 0)
    def _init():
        m_scr[...] = jnp.full_like(m_scr, -jnp.inf)
        acc_scr[...] = jnp.zeros_like(acc_scr)

    qh = q_ref[...]
    kh = k_ref[...]
    vh = v_ref[...]

    # (h, TK, TQ) = K^T Q, batched over heads, no explicit transpose.
    sim = jax.lax.dot_general(kh, qh, (((1,), (1,)), ((0,), (0,))),
                              preferred_element_type=jnp.float32)

    m_prev = m_scr[...]
    m_new = jnp.maximum(m_prev, jnp.max(sim, axis=1, keepdims=True))
    alpha = jnp.exp(m_prev - m_new)                                  # (h, 1, TQ) f32
    # bf16 exp on v6e/v7x (bf16 EUP/VPU); f32 on v5e and older.
    p = jnp.exp((sim - m_new).astype(exp_dtype)).astype(jnp.bfloat16)

    # PV matmul; V's appended ones-row makes row `dim_head` equal sum_k p
    # (restricted to valid keys), so l rides along in the accumulator.
    pv = jax.lax.dot_general(vh, p, (((2,), (1,)), ((0,), (0,))),
                             preferred_element_type=jnp.float32)     # (h, d+1, TQ)
    acc_scr[...] = alpha * acc_scr[...] + pv
    m_scr[...] = m_new

    @pl.when(ki == nk - 1)
    def _finalize():
        acc = acc_scr[...]
        l = acc[:, dim_head:dim_head + 1, :]                         # (h, 1, TQ)
        out = acc[:, 0:dim_head, :] * pl.reciprocal(l, approx=False)
        out = out.reshape(heads * dim_head, out.shape[-1])           # (hidden, TQ)
        # to_out: 1x1 conv with bias, produced directly in (C, TQ) layout.
        y = jax.lax.dot_general(wout_ref[...], out.astype(jnp.bfloat16),
                                (((0,), (0,)), ((), ())),
                                preferred_element_type=jnp.float32)  # (C, TQ)
        o_ref[...] = (y + bout_ref[...]).astype(o_ref.dtype)


# ---------------------------------------------------------------------------
# Wrapper
# ---------------------------------------------------------------------------
def attention_forward(x_nchw, params, *, heads, dim_head, tile=None):
    B, C, H, W = x_nchw.shape
    N = H * W
    hidden = heads * dim_head
    scale = dim_head ** -0.5

    # Chip-dependent defaults: 256 tiles + bf16 exp on v6e/v7x; 128 + f32 exp
    # on v5e and older (128x128 MXU, no bf16 VPU/EUP path).
    try:
        kind = jax.devices()[0].device_kind.lower()
    except Exception:
        kind = ""
    old_gen = any(t in kind for t in ("v2", "v3", "v4", "v5"))
    exp_dtype = jnp.float32 if old_gen else jnp.bfloat16
    if tile is None:
        tile = 128 if old_gen else 256

    # Pad the pixel axis up to a multiple of 128 (masked via V's ones-row);
    # never fall back to a single full-N tile.
    N_pad = ((N + 127) // 128) * 128
    tq = tile if N_pad % tile == 0 else 128
    tq = min(tq, N_pad)
    tk = tq

    # NCHW -> (B, C, N): free reshape; pad only when needed.
    x = x_nchw.reshape(B, C, N)
    if N_pad != N:
        x = jnp.pad(x, ((0, 0), (0, 0), (0, N_pad - N)))

    # Constant folding into weights (host-side, one time).
    g = (params["g"].reshape(C, 1) * (C ** 0.5)).astype(jnp.float32)
    wqkv = params["wqkv"].astype(jnp.float32)
    wqkv = jnp.concatenate([wqkv[:, :hidden] * scale, wqkv[:, hidden:]], axis=1)
    wqkv = wqkv.astype(jnp.bfloat16)                                 # (C, 3*hidden)
    wout = params["wout"].astype(jnp.bfloat16)                       # (hidden, C)
    bout = params["bout"].reshape(C, 1).astype(jnp.float32)

    # ---- pass 1: RMSNorm + QKV projection (once per pixel) ----
    proj_kernel = functools.partial(qkv_proj_kernel, heads=heads,
                                    dim_head=dim_head, n_valid=N, tile=tq)
    q, k, v = pl.pallas_call(
        proj_kernel,
        out_shape=(
            jax.ShapeDtypeStruct((B, heads, dim_head, N_pad), jnp.bfloat16),
            jax.ShapeDtypeStruct((B, heads, dim_head, N_pad), jnp.bfloat16),
            jax.ShapeDtypeStruct((B, heads, dim_head + 1, N_pad), jnp.bfloat16),
        ),
        grid=(B, N_pad // tq),
        in_specs=[
            pl.BlockSpec((None, C, tq), lambda b, j: (b, 0, j)),     # x tile
            pl.BlockSpec((C, 1), lambda b, j: (0, 0)),               # g * sqrt(C)
            pl.BlockSpec((C, 3 * hidden), lambda b, j: (0, 0)),      # Wqkv
        ],
        out_specs=(
            pl.BlockSpec((None, heads, dim_head, tq), lambda b, j: (b, 0, 0, j)),
            pl.BlockSpec((None, heads, dim_head, tq), lambda b, j: (b, 0, 0, j)),
            pl.BlockSpec((None, heads, dim_head + 1, tq), lambda b, j: (b, 0, 0, j)),
        ),
        compiler_params=pltpu.CompilerParams(
            dimension_semantics=("parallel", "parallel")),
    )(x, g, wqkv)

    # ---- pass 2: flash attention + fused to_out ----
    n_q = N_pad // tq
    n_k = N_pad // tk
    cost = pl.CostEstimate(
        flops=2 * B * heads * (2 * dim_head + 1) * N_pad * N_pad
              + 2 * B * hidden * C * N_pad,
        transcendentals=B * heads * N_pad * N_pad,
        bytes_accessed=2 * B * hidden * N_pad                        # Q read once
                       + 2 * B * (2 * hidden + heads) * N_pad * n_q  # K/V per q-tile
                       + x.dtype.itemsize * B * C * N_pad,           # output
    )
    attn = functools.partial(attn_kernel, heads=heads, dim_head=dim_head,
                             exp_dtype=exp_dtype)
    out = pl.pallas_call(
        attn,
        out_shape=jax.ShapeDtypeStruct((B, C, N_pad), x.dtype),
        grid=(B, n_q, n_k),
        in_specs=[
            pl.BlockSpec((None, heads, dim_head, tq), lambda b, qi, ki: (b, 0, 0, qi)),
            pl.BlockSpec((None, heads, dim_head, tk), lambda b, qi, ki: (b, 0, 0, ki)),
            pl.BlockSpec((None, heads, dim_head + 1, tk), lambda b, qi, ki: (b, 0, 0, ki)),
            pl.BlockSpec((hidden, C), lambda b, qi, ki: (0, 0)),     # Wout
            pl.BlockSpec((C, 1), lambda b, qi, ki: (0, 0)),          # out bias
        ],
        out_specs=pl.BlockSpec((None, C, tq), lambda b, qi, ki: (b, 0, qi)),
        scratch_shapes=[
            pltpu.VMEM((heads, 1, tq), jnp.float32),                 # running max m
            pltpu.VMEM((heads, dim_head + 1, tq), jnp.float32),      # acc (+ l row)
        ],
        compiler_params=pltpu.CompilerParams(
            dimension_semantics=("parallel", "parallel", "arbitrary")),
        cost_estimate=cost,
    )(q, k, v, wout, bout)

    if N_pad != N:
        out = out[:, :, :N]
    return out.reshape(B, C, H, W)


def reference_forward(x_nchw, params, *, heads, dim_head):
    """Pure-JAX f32 reference mirroring the PyTorch module."""
    B, C, H, W = x_nchw.shape
    N = H * W
    hidden = heads * dim_head
    x = x_nchw.reshape(B, C, N).transpose(0, 2, 1).astype(jnp.float32)
    nrm = jnp.maximum(jnp.sqrt(jnp.sum(x * x, axis=-1, keepdims=True)), 1e-12)
    xn = (x / nrm) * params["g"] * (C ** 0.5)
    qkv = xn @ params["wqkv"]
    q, k, v = (qkv[..., i * hidden:(i + 1) * hidden] for i in range(3))

    def split_heads(t):
        return t.reshape(B, N, heads, dim_head).transpose(0, 2, 1, 3)

    q, k, v = map(split_heads, (q, k, v))
    sim = jnp.einsum('bhnd,bhmd->bhnm', q, k) * (dim_head ** -0.5)
    attn = jax.nn.softmax(sim, axis=-1)
    out = jnp.einsum('bhnm,bhmd->bhnd', attn, v)
    out = out.transpose(0, 2, 1, 3).reshape(B, N, hidden)
    y = out @ params["wout"] + params["bout"]
    return y.transpose(0, 2, 1).reshape(B, C, H, W)


if __name__ == "__main__":
    # Small shapes consistent with the module (dim=32, 16x16 spatial -> N=256).
    B, dim, H, W = 2, 32, 16, 16
    heads, dim_head = 4, 32
    hidden = heads * dim_head

    key = jax.random.PRNGKey(0)
    kx, kq, ko, kb = jax.random.split(key, 4)

    x = jax.random.normal(kx, (B, dim, H, W), dtype=jnp.float32)

    # Deterministic parameter init (shapes from __init__; g=1 like PyTorch RMSNorm).
    params = {
        "g": jnp.ones((1, dim), dtype=jnp.float32),
        "wqkv": 0.1 * jax.random.normal(kq, (dim, 3 * hidden), dtype=jnp.float32),
        "wout": 0.1 * jax.random.normal(ko, (hidden, dim), dtype=jnp.float32),
        "bout": 0.01 * jax.random.normal(kb, (1, dim), dtype=jnp.float32),
    }

    y = attention_forward(x, params, heads=heads, dim_head=dim_head)
    y = jax.block_until_ready(y)

    y_ref = reference_forward(x, params, heads=heads, dim_head=dim_head)
    assert y.shape == (B, dim, H, W)
    # bf16 MXU operands / bf16 softmax probs with f32 accumulation -> relaxed
    # tolerance vs the f32 reference.
    err = float(jnp.max(jnp.abs(y - y_ref)))
    assert err < 5e-2, f"mismatch vs reference, max abs err={err}"

    print("KERNEL_OK")
</pallas_src>

<mosaic_0001>
module attributes {stable_mosaic.version = 11 : i64} {
  func.func @qkv_proj_kernel(%arg0: i32, %arg1: i32, %arg2: memref<1x32x256xf32, #tpu.memory_space<vmem>>, %arg3: memref<32x1xf32, #tpu.memory_space<vmem>>, %arg4: memref<32x384xbf16, #tpu.memory_space<vmem>>, %arg5: memref<1x4x32x256xbf16, #tpu.memory_space<vmem>>, %arg6: memref<1x4x32x256xbf16, #tpu.memory_space<vmem>>, %arg7: memref<1x4x33x256xbf16, #tpu.memory_space<vmem>>) attributes {dimension_semantics = [#tpu.dimension_semantics<parallel>, #tpu.dimension_semantics<parallel>], iteration_bounds = array<i64: 2, 1>, scalar_prefetch = 0 : i64, scratch_operands = 0 : i64, tpu.core_type = #tpu.core_type<tc>, window_params = [{transform_indices = @transform_0, window_bounds = array<i64: 1, 32, 256>}, {pipeline_mode = #tpu.pipeline_mode<synchronous>, transform_indices = @transform_1, window_bounds = array<i64: 32, 1>}, {pipeline_mode = #tpu.pipeline_mode<synchronous>, transform_indices = @transform_2, window_bounds = array<i64: 32, 384>}, {transform_indices = @transform_3, window_bounds = array<i64: 1, 4, 32, 256>}, {transform_indices = @transform_4, window_bounds = array<i64: 1, 4, 32, 256>}, {transform_indices = @transform_5, window_bounds = array<i64: 1, 4, 33, 256>}]} {
    %c0 = arith.constant 0 : index
    %c0_0 = arith.constant 0 : index
    %c0_1 = arith.constant 0 : index
    %0 = vector.load %arg2[%c0, %c0_0, %c0_1] : memref<1x32x256xf32, #tpu.memory_space<vmem>>, vector<1x32x256xf32>
    %1 = vector.shape_cast %0 : vector<1x32x256xf32> to vector<32x256xf32>
    %2 = arith.mulf %1, %1 : vector<32x256xf32>
    %cst = arith.constant dense<0.000000e+00> : vector<256xf32>
    %3 = vector.multi_reduction <add>, %2, %cst [0] : vector<32x256xf32> to vector<256xf32>
    %4 = vector.shape_cast %3 : vector<256xf32> to vector<1x256xf32>
    %cst_2 = arith.constant 1.000000e-24 : f32
    %5 = vector.broadcast %cst_2 : f32 to vector<1x256xf32>
    %6 = arith.maximumf %4, %5 : vector<1x256xf32>
    %7 = math.rsqrt %6 : vector<1x256xf32>
    %8 = vector.broadcast %7 : vector<1x256xf32> to vector<32x256xf32>
    %9 = arith.mulf %1, %8 : vector<32x256xf32>
    %c0_3 = arith.constant 0 : index
    %c0_4 = arith.constant 0 : index
    %10 = vector.load %arg3[%c0_3, %c0_4] : memref<32x1xf32, #tpu.memory_space<vmem>>, vector<32x1xf32>
    %11 = vector.broadcast %10 : vector<32x1xf32> to vector<32x256xf32>
    %12 = arith.mulf %9, %11 : vector<32x256xf32>
    %13 = arith.truncf %12 : vector<32x256xf32> to vector<32x256xbf16>
    %c0_5 = arith.constant 0 : index
    %c0_6 = arith.constant 0 : index
    %14 = vector.load %arg4[%c0_5, %c0_6] : memref<32x384xbf16, #tpu.memory_space<vmem>>, vector<32x384xbf16>
    %cst_7 = arith.constant dense<0.000000e+00> : vector<384x256xf32>
    %15 = tpu.matmul %14, %13, %cst_7 {dimension_numbers = #tpu.dot_dimension_numbers<[0], [0], [1], [1], [0, 1, 1, 1], [], []>} : vector<32x384xbf16>, vector<32x256xbf16>, vector<384x256xf32> -> vector<384x256xf32>
    %16 = vector.extract_strided_slice %15 {offsets = [0, 0], sizes = [128, 256], strides = [1, 1]} : vector<384x256xf32> to vector<128x256xf32>
    %17 = arith.truncf %16 : vector<128x256xf32> to vector<128x256xbf16>
    %18 = vector.shape_cast %17 : vector<128x256xbf16> to vector<4x32x256xbf16>
    %19 = vector.extract_strided_slice %15 {offsets = [128, 0], sizes = [128, 256], strides = [1, 1]} : vector<384x256xf32> to vector<128x256xf32>
    %20 = arith.truncf %19 : vector<128x256xf32> to vector<128x256xbf16>
    %21 = vector.shape_cast %20 : vector<128x256xbf16> to vector<4x32x256xbf16>
    %22 = vector.extract_strided_slice %15 {offsets = [256, 0], sizes = [128, 256], strides = [1, 1]} : vector<384x256xf32> to vector<128x256xf32>
    %23 = arith.truncf %22 : vector<128x256xf32> to vector<128x256xbf16>
    %24 = vector.shape_cast %23 : vector<128x256xbf16> to vector<4x32x256xbf16>
    %c0_8 = arith.constant 0 : index
    %c0_9 = arith.constant 0 : index
    %c0_10 = arith.constant 0 : index
    %c0_11 = arith.constant 0 : index
    %25 = vector.load %arg5[%c0_8, %c0_9, %c0_10, %c0_11] : memref<1x4x32x256xbf16, #tpu.memory_space<vmem>>, vector<1x4x32x256xbf16>
    %26 = vector.shape_cast %25 : vector<1x4x32x256xbf16> to vector<4x32x256xbf16>
    %27 = vector.shape_cast %18 : vector<4x32x256xbf16> to vector<1x4x32x256xbf16>
    tpu.vector_store %arg5[%c0_8, %c0_9, %c0_10, %c0_11], %27 {strides = array<i32>} : memref<1x4x32x256xbf16, #tpu.memory_space<vmem>>, vector<1x4x32x256xbf16>,
    %c0_12 = arith.constant 0 : index
    %c0_13 = arith.constant 0 : index
    %c0_14 = arith.constant 0 : index
    %c0_15 = arith.constant 0 : index
    %28 = vector.load %arg6[%c0_12, %c0_13, %c0_14, %c0_15] : memref<1x4x32x256xbf16, #tpu.memory_space<vmem>>, vector<1x4x32x256xbf16>
    %29 = vector.shape_cast %28 : vector<1x4x32x256xbf16> to vector<4x32x256xbf16>
    %30 = vector.shape_cast %21 : vector<4x32x256xbf16> to vector<1x4x32x256xbf16>
    tpu.vector_store %arg6[%c0_12, %c0_13, %c0_14, %c0_15], %30 {strides = array<i32>} : memref<1x4x32x256xbf16, #tpu.memory_space<vmem>>, vector<1x4x32x256xbf16>,
    %c256_i32 = arith.constant 256 : i32
    %31 = arith.muli %arg1, %c256_i32 : i32
    %32 = tpu.iota {dimensions = array<i32: 2>} : vector<1x1x256xi32>
    %33 = vector.broadcast %31 : i32 to vector<1x1x256xi32>
    %34 = arith.addi %33, %32 : vector<1x1x256xi32>
    %c256_i32_16 = arith.constant 256 : i32
    %35 = vector.broadcast %c256_i32_16 : i32 to vector<1x1x256xi32>
    %36 = arith.cmpi slt, %34, %35 : vector<1x1x256xi32>
    %37 = arith.extui %36 : vector<1x1x256xi1> to vector<1x1x256xi32>
    %38 = arith.sitofp %37 : vector<1x1x256xi32> to vector<1x1x256xf32>
    %39 = arith.truncf %38 : vector<1x1x256xf32> to vector<1x1x256xbf16>
    %40 = vector.shape_cast %39 : vector<1x1x256xbf16> to vector<1x1x256xbf16>
    %41 = vector.broadcast %40 : vector<1x1x256xbf16> to vector<4x1x256xbf16>
    %42 = tpu.concatenate %24, %41 in 1 : vector<4x32x256xbf16>, vector<4x1x256xbf16> -> vector<4x33x256xbf16>
    %c0_17 = arith.constant 0 : index
    %c0_18 = arith.constant 0 : index
    %c0_19 = arith.constant 0 : index
    %c0_20 = arith.constant 0 : index
    %43 = vector.load %arg7[%c0_17, %c0_18, %c0_19, %c0_20] : memref<1x4x33x256xbf16, #tpu.memory_space<vmem>>, vector<1x4x33x256xbf16>
    %44 = vector.shape_cast %43 : vector<1x4x33x256xbf16> to vector<4x33x256xbf16>
    %45 = vector.shape_cast %42 : vector<4x33x256xbf16> to vector<1x4x33x256xbf16>
    tpu.vector_store %arg7[%c0_17, %c0_18, %c0_19, %c0_20], %45 {strides = array<i32>} : memref<1x4x33x256xbf16, #tpu.memory_space<vmem>>, vector<1x4x33x256xbf16>,
    return
  }
  func.func @transform_0(%arg0: i32, %arg1: i32) -> (i32, i32, i32) {
    %c0_i32 = arith.constant 0 : i32
    %c0_i32_0 = arith.constant 0 : i32
    return %arg0, %c0_i32, %arg1 : i32, i32, i32
  }
  func.func @transform_1(%arg0: i32, %arg1: i32) -> (i32, i32) {
    %c0_i32 = arith.constant 0 : i32
    %c0_i32_0 = arith.constant 0 : i32
    %c0_i32_1 = arith.constant 0 : i32
    return %c0_i32, %c0_i32_0 : i32, i32
  }
  func.func @transform_2(%arg0: i32, %arg1: i32) -> (i32, i32) {
    %c0_i32 = arith.constant 0 : i32
    %c0_i32_0 = arith.constant 0 : i32
    %c0_i32_1 = arith.constant 0 : i32
    return %c0_i32, %c0_i32_0 : i32, i32
  }
  func.func @transform_3(%arg0: i32, %arg1: i32) -> (i32, i32, i32, i32) {
    %c0_i32 = arith.constant 0 : i32
    %c0_i32_0 = arith.constant 0 : i32
    %c0_i32_1 = arith.constant 0 : i32
    return %arg0, %c0_i32, %c0_i32_0, %arg1 : i32, i32, i32, i32
  }
  func.func @transform_4(%arg0: i32, %arg1: i32) -> (i32, i32, i32, i32) {
    %c0_i32 = arith.constant 0 : i32
    %c0_i32_0 = arith.constant 0 : i32
    %c0_i32_1 = arith.constant 0 : i32
    return %arg0, %c0_i32, %c0_i32_0, %arg1 : i32, i32, i32, i32
  }
  func.func @transform_5(%arg0: i32, %arg1: i32) -> (i32, i32, i32, i32) {
    %c0_i32 = arith.constant 0 : i32
    %c0_i32_0 = arith.constant 0 : i32
    %c0_i32_1 = arith.constant 0 : i32
    return %arg0, %c0_i32, %c0_i32_0, %arg1 : i32, i32, i32, i32
  }
}

</mosaic_0001>

<bundles_post_ra>
// kernel: tpu_custom_call.1
= control target key start
LH: loop header
LB: loop body
LE: loop exit
PB: predicated region body
PF: predicated region fallthrough
CT: control target
= control target key end

     0   :  { %11 = vsyncpa [#allocation3], 0  ;;  %s2308_s0 = inlined_call_operand.hbm [shape: f32[2,32,256], index: 0, kind: input, shape index: {}]   ;;  %s2309_s1 = inlined_call_operand.vmem [shape: f32[32,1], index: 1, kind: input, shape index: {}]   ;;  %s2310_s2 = inlined_call_operand.hbm [shape: bf16[32,384], index: 2, kind: input, shape index: {}]   ;;  %s2311_s3 = inlined_call_operand.hbm [shape: bf16[2,4,32,256], index: 3, kind: output, shape index: {0}]   ;;  %s2312_s4 = inlined_call_operand.hbm [shape: bf16[2,4,32,256], index: 4, kind: output, shape index: {1}]   ;;  %s2313_s5 = inlined_call_operand.vmem [shape: bf16[2,4,33,256], index: 5, kind: output, shape index: {2}]  }
   0x1   :  { %13 = vsyncpa [#allocation3 + $0x1], 0 }
   0x2   :  { %14 = vsyncpa [#allocation6], 0 }
   0x3   :  { %15 = vsyncpa [#allocation4], 0 }
   0x4   :  { %17 = vsyncpa [#allocation4 + $0x1], 0 }
   0x5   :  { %18 = vsyncpa [#allocation9], 0 }
   0x6   :  { %20 = vsyncpa [#allocation9 + $0x1], 0  ;;  %s1906_s18 = smov 0   ;;  %s1908_s19 = smov 0  }
   0x7   :  { %s1910_s20 = smov 0   ;;  %s1912_s21 = smov 0  }
   0x8   :  { %s1914_s22 = smov 0   ;;  %s1916_s23 = smov 0  }
   0x9 LB: > { %s1429_s24 = sadd.s32 4294967295, %s1862_s23   ;;  %s1430_s25 = sadd.s32 4294967294, %s1862_s23   ;;  %s1862_s23 = sphi %s1916_s23, %s26_s23   ;;  %s1858_s22 = sphi %s1914_s22, %s2337_s22   ;;  %s1854_s21 = sphi %s1912_s21, %s2336_s21   ;;  %s1850_s20 = sphi %s1910_s20, %s2335_s20   ;;  %s1846_s19 = sphi %s1908_s19, %s2334_s19   ;;  %s1842_s18 = sphi %s1906_s18, %s2333_s18  }
   0xa   : > { %p60_p0 = scmp.ne.s32.totalorder %s1846_s19, %s1842_s18  ;;  %p1940_p1 = scmp.eq.s32.totalorder %s1429_s24, 0 }
   0xb   : > { %p1944_p2 = scmp.eq.s32.totalorder %s1429_s24, 1  ;;  %p134_p3 = scmp.eq.s32.totalorder %s1430_s25, 1 }
   0xc   : > { %s2318_s26 = scalar_select %p1940_p1, 1, 0 }
   0xd   : > { %s2319_s27 = scalar_select %p1944_p2, 1, 0 }
   0xe   : > { %p1950_p4 = por %p1940_p1, %p60_p0  ;;  %p1431_p5 = scmp.ge.s32.totalorder %s1862_s23, 1 }
   0xf   : > { %p1955_p6 = por %p134_p3, %p60_p0  ;;  %p197_p7 = scmp.lt.s32.totalorder %s1862_s23, 3 }
  0x10   : > { %s2320_s28 = scalar_select %p1950_p4, 1, 0 }
  0x11   : > { %s2321_s29 = scalar_select %p1955_p6, 1, 0 }
  0x12   : > { %p1960_p8 = pnand %p1431_p5, %p197_p7  ;;  %s1864_s6 = smov [#allocation5]  }
  0x13   : > { %s212_s7 = sshll.u32 %s1864_s6, 4  ;;  %s38_s9 = sadd.s32 1, %s1858_s22  ;;  %s213_s7 = int_to_ptr.vmem [resolvable:$true] %s212_s7 }
  0x14   : > { %s2322_s30 = scalar_select %p1960_p8, 1, 0 }
  0x15   : > { %p1596_p9 = pneg %p1960_p8  ;;  %s1686_s12 = scalar_lea.hbm %s2310_s2, 768 }
  0x16   : > { %p1687_p12 = scmp.ne.s32.totalorder %s2310_s2, %s1686_s12  ;;  %p1693_p5 = scmp.lt.u32.totalorder %s1686_s12, %s2310_s2 }
  0x17   : > { %p1969_p11 = pnand %p1596_p9, %p1940_p1 }
  0x19   : > { %p1688_p13 = pneg %p1969_p11 }
  0x1b   : > { %p1689_p0 = pnand %p1688_p13, %p1687_p12 }
  0x1d   : > { %p1690_p3 = pneg %p1689_p0 }
  0x1f   : > { %p1695_p7 = pnand %p1693_p5, %p1690_p3 }
  0x21   : > { %1698 = shalt.err (!%p1695_p7)
}
  0x22   : > { %s1699_s17 = scalar_lea.vmem %s213_s7, 768  ;;  %p1707_p1 = scmp.lt.s32.totalorder %s213_s7, %s213_s7 }
  0x23   : > { %p1700_p9 = scmp.ne.s32.totalorder %s213_s7, %s1699_s17  ;;  %p1708_p4 = scmp.lt.s32.totalorder %s1699_s17, %s1699_s17 }
  0x25   : > { %p1702_p10 = pnand %p1700_p9, %p1688_p13  ;;  %p1709_p8 = por %p1708_p4, %p1707_p1 }
  0x27   : > { %p1703_p6 = pneg %p1702_p10 }
  0x29   : > { %p1710_p2 = pnand %p1709_p8, %p1703_p6 }
  0x2b   : > { %1713 = shalt.err (!%p1710_p2)
}
  0x2c   : > { %s1865_s24 = smov 192   ;;  %s1866_s25 = smov 12  }
  0x2d   : > { %1599 = dma.hbm_to_vmem [thread:$0]  (!%p1969_p11), %s2310_s2, 768, %s213_s7, [#allocation6], %s1865_s24, %s1865_s24, %s1866_s25  }
  0x2e   : > { %p40_p1 = scmp.ge.s32.totalorder %s38_s9, 2  ;;  %s47_s11 = sadd.s32 1, %s1850_s20 }
  0x2f   : > { %p54_p2 = scmp.ne.s32.totalorder %s1850_s20, %s1846_s19  ;;  %p55_p4 = scmp.eq.s32.totalorder %s1862_s23, 0 }
  0x30   : > { %s2339_s9 = smov (%p40_p1, %s38_s9), 0  ;;  %p2325_p8 = scmp.ne.s32.totalorder %s2319_s27, 0 }
  0x31   : > { %p1996_p6 = por %p55_p4, %p54_p2  ;;  %s42_s8 = ssub.s32 %s1858_s22, %s2339_s9 }
  0x32   : > { %p2002_p10 = por %p2325_p8, %p54_p2  ;;  %p1612_p12 = scmp.lt.s32.totalorder %s1862_s23, 2 }
  0x33   : > { %p45_p11 = scmp.eq.s32.totalorder %s42_s8, 0  ;;  %s226_s7 = sand.u32 1, %s1850_s20  }
  0x34   : > { %s1434_s14 = sshll.u32 %s226_s7, 6  ;;  %s1530_s16 = sshll.u32 %s1858_s22, 10 }
  0x35   : > { %s2011_s15 = scalar_select %p45_p11, %s1850_s20, %s47_s11  }
  0x36   : > { %s2017_s25 = scalar_lea.hbm %s2308_s0, %s1530_s16  ;;  %s230_s27 = scalar_lea.vmem [#allocation2], %s1434_s14 }
  0x37   : > { %s239_s6 = sshll.u32 %s230_s27, 4  ;;  %p2023_p13 = pnand %p1612_p12, %p1996_p6  ;;  %s2019_s6 = int_to_ptr.vmem [resolvable:$true] %s239_s6 }
  0x38   : > { %s2027_s11 = scalar_lea.sflag [#allocation3], %s226_s7  ;;  %s1714_s8 = scalar_lea.hbm %s2017_s25, 1024 }
  0x39   : > { %p1715_p0 = scmp.ne.s32.totalorder %s2017_s25, %s1714_s8  ;;  %p1716_p3 = pneg %p2023_p13 }
  0x3a   : > { %s1719_s12 = scalar_lea.hbm %s2308_s0, 2048  ;;  %p1720_p9 = scmp.lt.u32.totalorder %s2017_s25, %s2308_s0 }
  0x3b   : > { %p1717_p5 = pnand %p1716_p3, %p1715_p0  ;;  %p1721_p1 = scmp.lt.u32.totalorder %s1719_s12, %s1714_s8 }
  0x3c   : > { %p1723_p4 = scmp.lt.u32.totalorder %s1714_s8, %s2017_s25 }
  0x3d   : > { %p1718_p7 = pneg %p1717_p5  ;;  %p1722_p2 = por %p1721_p1, %p1720_p9 }
  0x3f   : > { %p1724_p6 = por %p1723_p4, %p1722_p2 }
  0x41   : > { %p1725_p8 = pnand %p1724_p6, %p1718_p7 }
  0x43   : > { %1728 = shalt.err (!%p1725_p8)
}
  0x44   : > { %s1729_s7 = scalar_lea.vmem %s2019_s6, 1024  ;;  %s1867_s27 = smov [#allocation2]  }
  0x45   : > { %p1730_p12 = scmp.ne.s32.totalorder %s2019_s6, %s1729_s7  ;;  %s1734_s14 = sshll.u32 %s1867_s27, 4  ;;  %s1735_s14 = int_to_ptr.vmem [resolvable:$false] %s1734_s14 }
  0x46   : > { %s1736_s16 = scalar_lea.vmem %s1735_s14, 2048  ;;  %p1737_p5 = scmp.lt.s32.totalorder %s2019_s6, %s1735_s14 }
  0x47   : > { %p1732_p11 = pnand %p1730_p12, %p1716_p3  ;;  %p1738_p9 = scmp.lt.s32.totalorder %s1736_s16, %s1729_s7 }
  0x49   : > { %p1733_p0 = pneg %p1732_p11  ;;  %p1739_p1 = por %p1738_p9, %p1737_p5 }
  0x4b   : > { %p1740_p2 = pnand %p1739_p1, %p1733_p0 }
  0x4d   : > { %1743 = shalt.err (!%p1740_p2)
}
  0x4e   : > { %s1868_s8 = smov 256   ;;  %s1869_s12 = smov 16  }
  0x4f   : > { %1603 = dma.hbm_to_vmem [thread:$0]  (!%p2023_p13), %s2017_s25, 1024, %s2019_s6, %s2027_s11, %s1868_s8, %s1868_s8, %s1869_s12  }
  0x50   : > { %p2328_p3 = scmp.ne.s32.totalorder %s2322_s30, 0 }
  0x51   : > { %s2058_s17 = sand.u32 (!%p2328_p3), 1, %s1846_s19   ;;  %p2329_p7 = scmp.ne.s32.totalorder (!%p2328_p3), %s2320_s28, 0 }
  0x52   : > { %251 = sbr.rel (%p2328_p3) target bundleno = 566 (0x236), region = 32  ;;  %s1438_s24 = sshll.u32 (!%p2328_p3), %s2058_s17, 6 }
  0x53   : > { %s254_s7 = scalar_lea.sflag (!%p2328_p3), [#allocation3], %s2058_s17  ;;  %s2062_s27 = scalar_lea.vmem (!%p2328_p3), [#allocation2], %s1438_s24 }
  0x59   : > { %1825 = dma.done.wait (%p2329_p7), %s254_s7, 1024  }
  0x5a   : > { %1827 = vsyncadd (%p2329_p7), %s254_s7, 4294966272  ;;  %p2330_p13 = scmp.ne.s32.totalorder %s2318_s26, 0 }
  0x5c   : > { %1829 = dma.done.wait (%p2330_p13), [#allocation6], 768  }
  0x5d   : > { %1831 = vsyncadd (%p2330_p13), [#allocation6], 4294966528  ;;  %v1870_v0 = vmov 0   ;;  %v362_v1 = vld [vmem:[%s2309_s1] sm:$0xff]  ;;  %v364_v2 = vld [vmem:[%s2309_s1 + $0x10] sm:$0xff]  ;;  %vm486_vm0 = vcmask 261120  }
  0x5e   : > { %1672 = vset.pattern.permute.xlu0 %v1870_v0  ;;  %1673 = vset.pattern.permute.xlu1 %v1870_v0  ;;  %v363_v3 = vld [vmem:[%s2309_s1 + $0x8] sm:$0xff]  ;;  %v365_v4 = vld [vmem:[%s2309_s1 + $0x18] sm:$0xff]  ;;  %v1674_v5 = vld [vmem:[#allocation5 + $0x4] ss:$12 sps:$4 sm:$0xff]   ;;  %p306_p4 = scmp.lt.s32.totalorder %s1854_s21, 1  ;;  %vm1177_vm1 = vcmask 1040384  }
  0x5f   : > { %591 = vmatprep.mubr.bf16.mxu0 %v1870_v0  ;;  %711 = vmatprep.mubr.bf16.mxu1 %v1870_v0  ;;  %v1676_v6 = vld [vmem:[#allocation5 + $0x1c] ss:$12 sps:$4 sm:$0xff]   ;;  %v1678_v7 = vld [vmem:[#allocation5] ss:$12 sps:$4 sm:$0xff]   ;;  %v1679_v8 = vld [vmem:[#allocation5 + $0x18] ss:$12 sps:$4 sm:$0xff]  }
  0x60   : > { %368 = vperm.xlu0 %1672, %v362_v1   ;;  %378 = vperm.xlu1 %1673, %v364_v2   ;;  %v1680_v9 = vld [vmem:[#allocation5 + $0x8] ss:$12 sps:$4 sm:$0xff]   ;;  %v1681_v10 = vld [vmem:[#allocation5 + $0x20] ss:$12 sps:$4 sm:$0xff]   ;;  %v319_v14 = vld [vmem:[%s2062_s27 + $0x18] sm:$0xff]  ;;  %s307_s16 = scalar_select %p306_p4, %s1854_s21, 1 }
  0x61   : > { %v316_v11 = vld [vmem:[%s2062_s27] sm:$0xff]  ;;  %v318_v12 = vld [vmem:[%s2062_s27 + $0x10] sm:$0xff]  ;;  %v317_v13 = vld [vmem:[%s2062_s27 + $0x8] sm:$0xff]  ;;  %v327_v19 = vmul.f32 %v319_v14, %v319_v14  ;;  %vm1178_vm2 = vsmask.f32 256  ;;  %vm1180_vm3 = vcmask 1044484  }
  0x62   : > { %v324_v15 = vmul.f32 %v316_v11, %v316_v11  ;;  %v326_v16 = vmul.f32 %v318_v12, %v318_v12  ;;  %v320_v17 = vld [vmem:[%s2062_s27 + $0x20] sm:$0xff]  ;;  %v325_v18 = vmul.f32 %v317_v13, %v317_v13  ;;  %v321_v20 = vld [vmem:[%s2062_s27 + $0x28] sm:$0xff]  ;;  %v322_v23 = vld [vmem:[%s2062_s27 + $0x30] sm:$0xff]  ;;  %s1585_s8 = smul.u32 160, %s307_s16  ;;  %vm1181_vm4 = vsmask.f32 4352 }
  0x63   : > { %v328_v21 = vmul.f32 %v320_v17, %v320_v17  ;;  %v329_v24 = vmul.f32 %v321_v20, %v321_v20  ;;  %v323_v26 = vld [vmem:[%s2062_s27 + $0x38] sm:$0xff]  ;;  %v330_v27 = vmul.f32 %v322_v23, %v322_v23  ;;  %vm1179_vm5 = vmand %vm1177_vm1, %vm1178_vm2  ;;  %s1440_s27 = sshll.u32 %s2058_s17, 7  ;;  %s1579_s28 = sshll.u32 %s1854_s21, 11 }
  0x64   : > { %373 = vperm.xlu0 %1672, %v363_v3   ;;  %383 = vperm.xlu1 %1673, %v365_v4   ;;  %v332_v22 = vadd.f32 %v326_v16, %v324_v15  ;;  %v341_v25 = vadd.f32 %v327_v19, %v325_v18  ;;  %v331_v29 = vmul.f32 %v323_v26, %v323_v26  ;;  %s2147_s7 = scalar_lea.vmem %s2313_s5, %s1585_s8  ;;  %vm1182_vm6 = vmand %vm1180_vm3, %vm1181_vm4  ;;  %s2158_s30 = scalar_lea.vmem [#allocation7], %s1440_s27 }
  0x65   : > { %vm1183_vm7 = vmor %vm1182_vm6, %vm1179_vm5  ;;  %s2163_s25 = scalar_lea.vmem [#allocation8], %s1440_s27  ;;  %s1238_s6 = sshll.u32 %s2158_s30, 4  ;;  %s2197_s6 = int_to_ptr.vmem [resolvable:$true] %s1238_s6 }
  0x66   : > { %v333_v28 = vadd.f32 %v332_v22, %v328_v21  ;;  %v342_v30 = vadd.f32 %v341_v25, %v329_v24  ;;  %s2195_s11 = scalar_lea.hbm %s2311_s3, %s1579_s28  ;;  %s1209_s14 = scalar_lea.sflag [#allocation4], %s2058_s17 }
  0x67   : > { %s1744_s16 = scalar_lea.vmem %s2197_s6, 2048  ;;  %s1872_s8 = smov [#allocation7]  }
  0x68   : > { %v334_v31 = vadd.f32 %v333_v28, %v330_v27  ;;  %v343_v32 = vadd.f32 %v342_v30, %v331_v29  ;;  %p1745_p6 = scmp.ne.s32.totalorder %s2197_s6, %s1744_s16  ;;  %s1748_s12 = sshll.u32 %s1872_s8, 4  ;;  %s1749_s12 = int_to_ptr.vmem [resolvable:$false] %s1748_s12 }
  0x69   : > { %s1750_s24 = scalar_lea.vmem %s1749_s12, 4096  ;;  %p1751_p11 = scmp.lt.s32.totalorder %s2197_s6, %s1749_s12 }
  0x6a   : > { %v335_v33 = vrot.slane %v334_v31, 4  ;;  %v344_v34 = vrot.slane %v343_v32, 4  ;;  %p1746_p8 = pnand %p1745_p6, %p2002_p10  ;;  %p1752_p0 = scmp.lt.s32.totalorder %s1750_s24, %s1744_s16 }
  0x6c   : > { %v336_v35 = vadd.f32 %v335_v33, %v334_v31  ;;  %v345_v36 = vadd.f32 %v344_v34, %v343_v32  ;;  %v1871_v34 = vmov 1.0|1.0   ;;  %p1747_p12 = pneg %p1746_p8  ;;  %p1753_p5 = por %p1752_p0, %p1751_p11 }
  0x6e   : > { %v337_v37 = vrot.slane %v336_v35, 2  ;;  %v346_v38 = vrot.slane %v345_v36, 2  ;;  %p1754_p9 = pnand %p1753_p5, %p1747_p12 }
  0x70   : > { %v338_v39 = vadd.f32 %v337_v37, %v336_v35  ;;  %v347_v40 = vadd.f32 %v346_v38, %v345_v36  ;;  %v1509_v35 = vcombine.low %v1871_v34, %v1871_v34  ;;  %v1191_v36 = vld [vmem:[%s2147_s7 + $0x48] sm:$0x11]  ;;  %v1198_v37 = vld [vmem:[%s2147_s7 + $0x70] sm:$0x11]  ;;  %v1205_v38 = vld [vmem:[%s2147_s7 + $0x98] sm:$0x11] }
  0x72   : > { %v339_v41 = vrot.slane %v338_v39, 1  ;;  %v348_v42 = vrot.slane %v347_v40, 1 }
  0x74   : > { %v340_v43 = vadd.f32 %v339_v41, %v338_v39  ;;  %v349_v44 = vadd.f32 %v348_v42, %v347_v40  ;;  %v1192_v40 = vsel %vm1183_vm7, %v1509_v35, %v1191_v36  ;;  %v1199_v41 = vsel %vm1183_vm7, %v1509_v35, %v1198_v37 }
  0x75   : > { %v1206_v42 = vsel %vm1183_vm7, %v1509_v35, %v1205_v38  ;;  %1193 = vst [vmem:[%s2147_s7 + $0x48] sm:$0x11] %v1192_v40  ;;  %1200 = vst [vmem:[%s2147_s7 + $0x70] sm:$0x11] %v1199_v41 }
  0x76   : > { %v350_v45 = vmax.f32 %v340_v43, 1e-24  ;;  %v351_v46 = vmax.f32 %v349_v44, 1e-24  ;;  %1207 = vst [vmem:[%s2147_s7 + $0x98] sm:$0x11] %v1206_v42 }
  0x78   : > { %1682 = vrsqrt.f32 %v350_v45 }
  0x79   : > { %1684 = vrsqrt.f32 %v351_v46 }
  0x82   : > { %454 = vxpose.xlu0.c.b16.start [1/2] (short) %v1674_v5, 128  ;;  %v1683_v47 = vpop.eup %1682 }
  0x83   : > { %v1685_v48 = vpop.eup %1684  ;;  %v354_v51 = vmul.f32 %v1683_v47, %v316_v11  ;;  %v356_v54 = vmul.f32 %v1683_v47, %v318_v12  ;;  %v358_v57 = vmul.f32 %v1683_v47, %v320_v17  ;;  %v360_v58 = vmul.f32 %v1683_v47, %v322_v23 }
  0x84   : > { %v359_v49 = vmul.f32 %v1685_v48, %v321_v20  ;;  %v355_v53 = vmul.f32 %v1685_v48, %v317_v13  ;;  %v357_v55 = vmul.f32 %v1685_v48, %v319_v14  ;;  %v361_v56 = vmul.f32 %v1685_v48, %v323_v26 }
  0x86   : > { %455 = vxpose.xlu0.c.b16.end [2/2] (short) %v1676_v6, 128 }
  0x87   : > { %438 = vxpose.xlu1.c.b16.start [1/2] (short) %v1678_v7, 128 }
  0x8b   : > { %439 = vxpose.xlu1.c.b16.end [2/2] (short) %v1679_v8, 128 }
  0x9f   : > { %470 = vxpose.xlu0.c.b16.start [1/2] (short) %v1680_v9, 128 }
  0xa3   : > { %471 = vxpose.xlu0.c.b16.end [2/2] (short) %v1681_v10, 128 }
  0xdf   : > { %v369_v50 = vpop.permute.xlu0 %368  ;;  %v379_v52 = vpop.permute.xlu1 %378 }
  0xe0   : > { %v391_v59 = vmul.f32 %v379_v52, %v359_v49  ;;  %v386_v60 = vmul.f32 %v369_v50, %v354_v51  ;;  %v387_v63 = vmul.f32 %v369_v50, %v355_v53  ;;  %v390_v4 = vmul.f32 %v379_v52, %v358_v57 }
  0xe3   : > { %v374_v61 = vpop.permute.xlu0 %373  ;;  %v384_v62 = vpop.permute.xlu1 %383 }
  0xe4   : > { %v388_v1 = vmul.f32 %v374_v61, %v356_v54  ;;  %v389_v2 = vmul.f32 %v374_v61, %v357_v55  ;;  %v393_v3 = vmul.f32 %v384_v62, %v361_v56  ;;  %v392_v5 = vmul.f32 %v384_v62, %v360_v58 }
  0xe6   : > { %v397_v6 = vpack.c.bf16 %v393_v3, %v391_v59  ;;  %v395_v7 = vpack.c.bf16 %v389_v2, %v387_v63  ;;  %v394_v8 = vpack.c.bf16 %v388_v1, %v386_v60  ;;  %v396_v10 = vpack.c.bf16 %v392_v5, %v390_v4 }
  0xe8   : > { %v462_v9 = vpop.trf.xlu0  ;;  %559 = vmatprep.subr.bf16.mxu0 %v395_v7  ;;  %1581 = vmatprep.subr.bf16.mxu1 %v395_v7 }
  0xe9   : > { %560 = vmatpush1.bf16.msra.mxu0 %v394_v8  ;;  %1583 = vmatpush1.bf16.msra.mxu1 %v394_v8 }
  0xea   : > { %561 = vmatprep.subr.bf16.mxu0 %v397_v6  ;;  %1582 = vmatprep.subr.bf16.mxu1 %v397_v6 }
  0xec   : > { %v463_v11 = vpop.trf.xlu0 }
  0xed   : > { %562 = vmatpush1.bf16.msra.mxu0 %v396_v10  ;;  %1584 = vmatpush1.bf16.msra.mxu1 %v396_v10  ;;  %v446_v12 = vpop.trf.xlu1 }
  0xf0   : > { %v464_v13 = vpop.trf.xlu0  ;;  %1449 = vmatmul.mubr.msk.bf16.vlgmr.msra.gmra.mrb[0].mxu0 %vm486_vm0, %v446_v12 }
  0xf1   : > { %601 = vmatprep.mubr.bf16.mxu0 %v1870_v0  ;;  %v447_v15 = vpop.trf.xlu1 }
  0xf4   : > { %v465_v14 = vpop.trf.xlu0 }
  0xf5   : > { %v448_v17 = vpop.trf.xlu1 }
  0xf8   : > { %v466_v16 = vpop.trf.xlu0  ;;  %1450 = vmatmul.mubr.msk.bf16.gmra.mrb[4].mxu0 %vm486_vm0, %v447_v15 }
  0xf9   : > { %1461 = vmatmul.mubr.msk.bf16.vlgmr.msra.gmra.mrb[0].mxu1 %vm486_vm0, %v466_v16  ;;  %611 = vmatprep.mubr.bf16.mxu0 %v1870_v0  ;;  %v449_v19 = vpop.trf.xlu1 }
  0xfa   : > { %721 = vmatprep.mubr.bf16.mxu1 %v1870_v0 }
  0xfc   : > { %v467_v18 = vpop.trf.xlu0 }
  0xfd   : > { %v450_v21 = vpop.trf.xlu1 }
 0x100   : > { %1451 = vmatmul.mubr.msk.bf16.gmra.mrb[8].mxu0 %vm486_vm0, %v448_v17  ;;  %v468_v20 = vpop.trf.xlu0 }
 0x101   : > { %1462 = vmatmul.mubr.msk.bf16.gmra.mrb[4].mxu1 %vm486_vm0, %v467_v18  ;;  %621 = vmatprep.mubr.bf16.mxu0 %v1870_v0  ;;  %v451_v23 = vpop.trf.xlu1 }
 0x102   : > { %731 = vmatprep.mubr.bf16.mxu1 %v1870_v0 }
 0x104   : > { %v469_v22 = vpop.trf.xlu0 }
 0x105   : > { %v452_v25 = vpop.trf.xlu1 }
 0x108   : > { %1452 = vmatmul.mubr.msk.bf16.gmra.mrb[12].mxu0 %vm486_vm0, %v449_v19  ;;  %v478_v24 = vpop.trf.xlu0 }
 0x109   : > { %1463 = vmatmul.mubr.msk.bf16.gmra.mrb[8].mxu1 %vm486_vm0, %v468_v20  ;;  %631 = vmatprep.mubr.bf16.mxu0 %v1870_v0  ;;  %v453_v27 = vpop.trf.xlu1 }
 0x10a   : > { %741 = vmatprep.mubr.bf16.mxu1 %v1870_v0 }
 0x10c   : > { %v479_v26 = vpop.trf.xlu0 }
 0x110   : > { %1453 = vmatmul.mubr.msk.bf16.gmra.mrb[16].mxu0 %vm486_vm0, %v450_v21  ;;  %v480_v28 = vpop.trf.xlu0 }
 0x111   : > { %1464 = vmatmul.mubr.msk.bf16.gmra.mrb[12].mxu1 %vm486_vm0, %v469_v22  ;;  %641 = vmatprep.mubr.bf16.mxu0 %v1870_v0 }
 0x112   : > { %751 = vmatprep.mubr.bf16.mxu1 %v1870_v0 }
 0x114   : > { %v481_v29 = vpop.trf.xlu0 }
 0x118   : > { %1454 = vmatmul.mubr.msk.bf16.gmra.mrb[20].mxu0 %vm486_vm0, %v451_v23  ;;  %v482_v30 = vpop.trf.xlu0 }
 0x119   : > { %1465 = vmatmul.mubr.msk.bf16.gmra.mrb[16].mxu1 %vm486_vm0, %v478_v24  ;;  %651 = vmatprep.mubr.bf16.mxu0 %v1870_v0 }
 0x11a   : > { %761 = vmatprep.mubr.bf16.mxu1 %v1870_v0 }
 0x11c   : > { %v483_v31 = vpop.trf.xlu0 }
 0x120   : > { %1455 = vmatmul.mubr.msk.bf16.gmra.mrb[24].mxu0 %vm486_vm0, %v452_v25  ;;  %v484_v32 = vpop.trf.xlu0 }
 0x121   : > { %1466 = vmatmul.mubr.msk.bf16.gmra.mrb[20].mxu1 %vm486_vm0, %v479_v26  ;;  %661 = vmatprep.mubr.bf16.mxu0 %v1870_v0 }
 0x122   : > { %771 = vmatprep.mubr.bf16.mxu1 %v1870_v0 }
 0x124   : > { %v485_v33 = vpop.trf.xlu0 }
 0x128   : > { %1456 = vmatmul.mubr.msk.bf16.gmra.mrb[28].mxu0 %vm486_vm0, %v453_v27 }
 0x129   : > { %1467 = vmatmul.mubr.msk.bf16.gmra.mrb[24].mxu1 %vm486_vm0, %v480_v28  ;;  %671 = vmatprep.mubr.bf16.mxu0 %v1870_v0 }
 0x12a   : > { %781 = vmatprep.mubr.bf16.mxu1 %v1870_v0 }
 0x130   : > { %1457 = vmatmul.mubr.msk.bf16.gmra.mrb[32].mxu0 %vm486_vm0, %v462_v9 }
 0x131   : > { %1468 = vmatmul.mubr.msk.bf16.gmra.mrb[28].mxu1 %vm486_vm0, %v481_v29  ;;  %681 = vmatprep.mubr.bf16.mxu0 %v1870_v0 }
 0x132   : > { %791 = vmatprep.mubr.bf16.mxu1 %v1870_v0 }
 0x138   : > { %1458 = vmatmul.mubr.msk.bf16.gmra.mrb[36].mxu0 %vm486_vm0, %v463_v11 }
 0x139   : > { %1469 = vmatmul.mubr.msk.bf16.gmra.mrb[32].mxu1 %vm486_vm0, %v482_v30  ;;  %691 = vmatprep.mubr.bf16.mxu0 %v1870_v0 }
 0x13a   : > { %801 = vmatprep.mubr.bf16.mxu1 %v1870_v0 }
 0x140   : > { %1459 = vmatmul.mubr.msk.bf16.gmra.mrb[40].mxu0 %vm486_vm0, %v464_v13 }
 0x141   : > { %1470 = vmatmul.mubr.msk.bf16.gmra.mrb[36].mxu1 %vm486_vm0, %v483_v31  ;;  %701 = vmatprep.mubr.bf16.mxu0 %v1870_v0 }
 0x142   : > { %811 = vmatprep.mubr.bf16.mxu1 %v1870_v0 }
 0x148   : > { %1460 = vmatmul.mubr.msk.bf16.gmra.mrb[44].mxu0 %vm486_vm0, %v465_v14 }
 0x149   : > { %1471 = vmatmul.mubr.msk.bf16.gmra.mrb[40].mxu1 %vm486_vm0, %v484_v32 }
 0x14a   : > { %821 = vmatprep.mubr.bf16.mxu1 %v1870_v0  ;;  %v1184_v0 = vld [vmem:[%s2147_s7 + $0x20] sm:$0x11] }
 0x14b   : > { %v1185_v39 = vsel %vm1183_vm7, %v1509_v35, %v1184_v0 }
 0x14c   : > { %1186 = vst [vmem:[%s2147_s7 + $0x20] sm:$0x11] %v1185_v39 }
 0x151   : > { %1472 = vmatmul.mubr.msk.bf16.gmra.mrb[44].mxu1 %vm486_vm0, %v485_v33 }
 0x1c3   : > { %v593_v43 = vpop.f32.mrb[0].mxu0 }
 0x1c4   : > { %v595_v44 = vpop.f32.mrb[1].mxu0 }
 0x1c5   : > { %v1531_v45 = vpack.c.bf16 %v595_v44, %v593_v43  ;;  %v597_v46 = vpop.f32.mrb[2].mxu0 }
 0x1c6   : > { %v599_v47 = vpop.f32.mrb[3].mxu0 }
 0x1c7   : > { %960 = vst [vmem:[%s2158_s30] sm:$0xff] %v1531_v45  ;;  %v1532_v48 = vpack.c.bf16 %v599_v47, %v597_v46 }
 0x1c9   : > { %961 = vst [vmem:[%s2158_s30 + $0x8] sm:$0xff] %v1532_v48 }
 0x1cb   : > { %v603_v49 = vpop.f32.mrb[4].mxu0 }
 0x1cc   : > { %v713_v50 = vpop.f32.mrb[0].mxu1  ;;  %v605_v51 = vpop.f32.mrb[5].mxu0 }
 0x1cd   : > { %v715_v52 = vpop.f32.mrb[1].mxu1  ;;  %v1533_v53 = vpack.c.bf16 %v605_v51, %v603_v49  ;;  %v607_v54 = vpop.f32.mrb[6].mxu0 }
 0x1ce   : > { %v1555_v55 = vpack.c.bf16 %v715_v52, %v713_v50  ;;  %v717_v56 = vpop.f32.mrb[2].mxu1  ;;  %v609_v57 = vpop.f32.mrb[7].mxu0 }
 0x1cf   : > { %v719_v58 = vpop.f32.mrb[3].mxu1  ;;  %962 = vst [vmem:[%s2158_s30 + $0x10] sm:$0xff] %v1533_v53  ;;  %v1534_v59 = vpack.c.bf16 %v609_v57, %v607_v54 }
 0x1d0   : > { %1064 = vst [vmem:[%s2163_s25 + $0x40] sm:$0xff] %v1555_v55  ;;  %v1556_v60 = vpack.c.bf16 %v719_v58, %v717_v56 }
 0x1d1   : > { %963 = vst [vmem:[%s2158_s30 + $0x18] sm:$0xff] %v1534_v59 }
 0x1d2   : > { %1065 = vst [vmem:[%s2163_s25 + $0x48] sm:$0xff] %v1556_v60 }
 0x1d3   : > { %v613_v61 = vpop.f32.mrb[8].mxu0 }
 0x1d4   : > { %v723_v62 = vpop.f32.mrb[4].mxu1  ;;  %v615_v63 = vpop.f32.mrb[9].mxu0 }
 0x1d5   : > { %v725_v1 = vpop.f32.mrb[5].mxu1  ;;  %v1535_v2 = vpack.c.bf16 %v615_v63, %v613_v61  ;;  %v617_v3 = vpop.f32.mrb[10].mxu0 }
 0x1d6   : > { %v1557_v4 = vpack.c.bf16 %v725_v1, %v723_v62  ;;  %v727_v5 = vpop.f32.mrb[6].mxu1  ;;  %v619_v6 = vpop.f32.mrb[11].mxu0 }
 0x1d7   : > { %v729_v7 = vpop.f32.mrb[7].mxu1  ;;  %964 = vst [vmem:[%s2158_s30 + $0x20] sm:$0xff] %v1535_v2  ;;  %v1536_v8 = vpack.c.bf16 %v619_v6, %v617_v3 }
 0x1d8   : > { %1066 = vst [vmem:[%s2163_s25 + $0x50] sm:$0xff] %v1557_v4  ;;  %v1558_v9 = vpack.c.bf16 %v729_v7, %v727_v5 }
 0x1d9   : > { %965 = vst [vmem:[%s2158_s30 + $0x28] sm:$0xff] %v1536_v8 }
 0x1da   : > { %1067 = vst [vmem:[%s2163_s25 + $0x58] sm:$0xff] %v1558_v9 }
 0x1db   : > { %v623_v10 = vpop.f32.mrb[12].mxu0 }
 0x1dc   : > { %v733_v11 = vpop.f32.mrb[8].mxu1  ;;  %v625_v12 = vpop.f32.mrb[13].mxu0 }
 0x1dd   : > { %v735_v13 = vpop.f32.mrb[9].mxu1  ;;  %v1537_v14 = vpack.c.bf16 %v625_v12, %v623_v10  ;;  %v627_v15 = vpop.f32.mrb[14].mxu0 }
 0x1de   : > { %v1559_v16 = vpack.c.bf16 %v735_v13, %v733_v11  ;;  %v737_v17 = vpop.f32.mrb[10].mxu1  ;;  %v629_v18 = vpop.f32.mrb[15].mxu0 }
 0x1df   : > { %v739_v19 = vpop.f32.mrb[11].mxu1  ;;  %966 = vst [vmem:[%s2158_s30 + $0x30] sm:$0xff] %v1537_v14  ;;  %v1538_v20 = vpack.c.bf16 %v629_v18, %v627_v15 }
 0x1e0   : > { %1068 = vst [vmem:[%s2163_s25 + $0x60] sm:$0xff] %v1559_v16  ;;  %v1560_v21 = vpack.c.bf16 %v739_v19, %v737_v17 }
 0x1e1   : > { %967 = vst [vmem:[%s2158_s30 + $0x38] sm:$0xff] %v1538_v20 }
 0x1e2   : > { %1069 = vst [vmem:[%s2163_s25 + $0x68] sm:$0xff] %v1560_v21 }
 0x1e3   : > { %v633_v22 = vpop.f32.mrb[16].mxu0 }
 0x1e4   : > { %v743_v23 = vpop.f32.mrb[12].mxu1  ;;  %v635_v24 = vpop.f32.mrb[17].mxu0 }
 0x1e5   : > { %v745_v25 = vpop.f32.mrb[13].mxu1  ;;  %v1539_v26 = vpack.c.bf16 %v635_v24, %v633_v22  ;;  %v637_v27 = vpop.f32.mrb[18].mxu0 }
 0x1e6   : > { %v1561_v28 = vpack.c.bf16 %v745_v25, %v743_v23  ;;  %v747_v29 = vpop.f32.mrb[14].mxu1  ;;  %v639_v30 = vpop.f32.mrb[19].mxu0 }
 0x1e7   : > { %v749_v31 = vpop.f32.mrb[15].mxu1  ;;  %968 = vst [vmem:[%s2158_s30 + $0x40] sm:$0xff] %v1539_v26  ;;  %v1540_v32 = vpack.c.bf16 %v639_v30, %v637_v27 }
 0x1e8   : > { %1070 = vst [vmem:[%s2163_s25 + $0x70] sm:$0xff] %v1561_v28  ;;  %v1562_v33 = vpack.c.bf16 %v749_v31, %v747_v29 }
 0x1e9   : > { %969 = vst [vmem:[%s2158_s30 + $0x48] sm:$0xff] %v1540_v32 }
 0x1ea   : > { %1071 = vst [vmem:[%s2163_s25 + $0x78] sm:$0xff] %v1562_v33 }
 0x1eb   : > { %v643_v34 = vpop.f32.mrb[20].mxu0 }
 0x1ec   : > { %v753_v35 = vpop.f32.mrb[16].mxu1  ;;  %v645_v0 = vpop.f32.mrb[21].mxu0 }
 0x1ed   : > { %v755_v36 = vpop.f32.mrb[17].mxu1  ;;  %v1541_v37 = vpack.c.bf16 %v645_v0, %v643_v34  ;;  %v647_v38 = vpop.f32.mrb[22].mxu0 }
 0x1ee   : > { %v1563_v39 = vpack.c.bf16 %v755_v36, %v753_v35  ;;  %v757_v40 = vpop.f32.mrb[18].mxu1  ;;  %v649_v41 = vpop.f32.mrb[23].mxu0 }
 0x1ef   : > { %v759_v42 = vpop.f32.mrb[19].mxu1  ;;  %970 = vst [vmem:[%s2158_s30 + $0x50] sm:$0xff] %v1541_v37  ;;  %v1542_v43 = vpack.c.bf16 %v649_v41, %v647_v38 }
 0x1f0   : > { %1173 = vst [vmem:[%s2147_s7] sm:$0xff] %v1563_v39  ;;  %v1564_v44 = vpack.c.bf16 %v759_v42, %v757_v40 }
 0x1f1   : > { %971 = vst [vmem:[%s2158_s30 + $0x58] sm:$0xff] %v1542_v43 }
 0x1f2   : > { %1174 = vst [vmem:[%s2147_s7 + $0x8] sm:$0xff] %v1564_v44 }
 0x1f3   : > { %v653_v45 = vpop.f32.mrb[24].mxu0 }
 0x1f4   : > { %v763_v46 = vpop.f32.mrb[20].mxu1  ;;  %v655_v47 = vpop.f32.mrb[25].mxu0 }
 0x1f5   : > { %v765_v48 = vpop.f32.mrb[21].mxu1  ;;  %v1543_v49 = vpack.c.bf16 %v655_v47, %v653_v45  ;;  %v657_v50 = vpop.f32.mrb[26].mxu0 }
 0x1f6   : > { %v1565_v51 = vpack.c.bf16 %v765_v48, %v763_v46  ;;  %v767_v52 = vpop.f32.mrb[22].mxu1  ;;  %v659_v53 = vpop.f32.mrb[27].mxu0 }
 0x1f7   : > { %v769_v54 = vpop.f32.mrb[23].mxu1  ;;  %972 = vst [vmem:[%s2158_s30 + $0x60] sm:$0xff] %v1543_v49  ;;  %v1544_v55 = vpack.c.bf16 %v659_v53, %v657_v50 }
 0x1f8   : > { %1175 = vst [vmem:[%s2147_s7 + $0x10] sm:$0xff] %v1565_v51  ;;  %v1566_v56 = vpack.c.bf16 %v769_v54, %v767_v52 }
 0x1f9   : > { %973 = vst [vmem:[%s2158_s30 + $0x68] sm:$0xff] %v1544_v55 }
 0x1fa   : > { %1176 = vst [vmem:[%s2147_s7 + $0x18] sm:$0xff] %v1566_v56 }
 0x1fb   : > { %v663_v57 = vpop.f32.mrb[28].mxu0 }
 0x1fc   : > { %v773_v58 = vpop.f32.mrb[24].mxu1  ;;  %v665_v59 = vpop.f32.mrb[29].mxu0 }
 0x1fd   : > { %v775_v60 = vpop.f32.mrb[25].mxu1  ;;  %v1545_v61 = vpack.c.bf16 %v665_v59, %v663_v57  ;;  %v667_v62 = vpop.f32.mrb[30].mxu0 }
 0x1fe   : > { %v1567_v63 = vpack.c.bf16 %v775_v60, %v773_v58  ;;  %v777_v1 = vpop.f32.mrb[26].mxu1  ;;  %v669_v2 = vpop.f32.mrb[31].mxu0 }
 0x1ff   : > { %v779_v3 = vpop.f32.mrb[27].mxu1  ;;  %974 = vst [vmem:[%s2158_s30 + $0x70] sm:$0xff] %v1545_v61  ;;  %v1546_v4 = vpack.c.bf16 %v669_v2, %v667_v62 }
 0x200   : > { %1187 = vst [vmem:[%s2147_s7 + $0x28] sm:$0xff] %v1567_v63  ;;  %v1568_v5 = vpack.c.bf16 %v779_v3, %v777_v1 }
 0x201   : > { %975 = vst [vmem:[%s2158_s30 + $0x78] sm:$0xff] %v1546_v4 }
 0x202   : > { %1188 = vst [vmem:[%s2147_s7 + $0x30] sm:$0xff] %v1568_v5 }
 0x203   : > { %1757 = shalt.err (!%p1754_p9)
}
 0x204   : > { %s1758_s27 = scalar_lea.hbm %s2195_s11, 2048  ;;  %s1762_s10 = scalar_lea.hbm %s2311_s3, 4096 }
 0x205   : > { %p1759_p1 = scmp.ne.s32.totalorder %s2195_s11, %s1758_s27  ;;  %p1763_p7 = scmp.lt.u32.totalorder %s2195_s11, %s2311_s3 }
 0x206   : > { %p1764_p13 = scmp.lt.u32.totalorder %s1762_s10, %s1758_s27  ;;  %p1766_p6 = scmp.lt.u32.totalorder %s1758_s27, %s2195_s11 }
 0x207   : > { %p1760_p2 = pnand %p1759_p1, %p2002_p10 }
 0x208   : > { %p1765_p4 = por %p1764_p13, %p1763_p7 }
 0x209   : > { %p1761_p3 = pneg %p1760_p2 }
 0x20a   : > { %p1767_p8 = por %p1766_p6, %p1765_p4 }
 0x20c   : > { %p1768_p12 = pnand %p1767_p8, %p1761_p3 }
 0x20e   : > { %1771 = shalt.err (!%p1768_p12)
}
 0x20f   : > { %s1873_s16 = smov 128   ;;  %s1874_s24 = smov 8   ;;  %v673_v6 = vpop.f32.mrb[32].mxu0  ;;  %v783_v8 = vpop.f32.mrb[28].mxu1 }
 0x210   : > { %1592 = dma.vmem_to_hbm [thread:$0]  (%p2002_p10), %s2197_s6, 2048, %s2195_s11, %s1209_s14, %s1873_s16, %s1873_s16, %s1874_s24   ;;  %v675_v7 = vpop.f32.mrb[33].mxu0  ;;  %v785_v11 = vpop.f32.mrb[29].mxu1 }
 0x211   : > { %v1547_v9 = vpack.c.bf16 %v675_v7, %v673_v6  ;;  %v677_v10 = vpop.f32.mrb[34].mxu0  ;;  %v1569_v12 = vpack.c.bf16 %v785_v11, %v783_v8  ;;  %v787_v14 = vpop.f32.mrb[30].mxu1  ;;  %s1256_s6 = sshll.u32 %s2163_s25, 4  ;;  %s2249_s27 = scalar_lea.hbm %s2312_s4, %s1579_s28  ;;  %s2251_s6 = int_to_ptr.vmem [resolvable:$true] %s1256_s6 }
 0x212   : > { %v679_v13 = vpop.f32.mrb[35].mxu0  ;;  %v789_v16 = vpop.f32.mrb[31].mxu1  ;;  %s1214_s30 = scalar_lea.sflag [#allocation9], %s2058_s17  ;;  %s1772_s26 = scalar_lea.vmem %s2251_s6, 2048 }
 0x213   : > { %1056 = vst [vmem:[%s2163_s25] sm:$0xff] %v1547_v9  ;;  %v1548_v15 = vpack.c.bf16 %v679_v13, %v677_v10  ;;  %1189 = vst [vmem:[%s2147_s7 + $0x38] sm:$0xff] %v1569_v12  ;;  %v1570_v17 = vpack.c.bf16 %v789_v16, %v787_v14  ;;  %v683_v18 = vpop.f32.mrb[36].mxu0  ;;  %v793_v20 = vpop.f32.mrb[32].mxu1  ;;  %p1773_p11 = scmp.ne.s32.totalorder %s2251_s6, %s1772_s26  ;;  %s1875_s21 = smov [#allocation8]  }
 0x214   : > { %v685_v19 = vpop.f32.mrb[37].mxu0  ;;  %v795_v23 = vpop.f32.mrb[33].mxu1  ;;  %s1776_s10 = sshll.u32 %s1875_s21, 4  ;;  %s1777_s10 = int_to_ptr.vmem [resolvable:$false] %s1776_s10 }
 0x215   : > { %1057 = vst [vmem:[%s2163_s25 + $0x8] sm:$0xff] %v1548_v15  ;;  %1190 = vst [vmem:[%s2147_s7 + $0x40] sm:$0xff] %v1570_v17  ;;  %v1549_v21 = vpack.c.bf16 %v685_v19, %v683_v18  ;;  %v687_v22 = vpop.f32.mrb[38].mxu0  ;;  %v1571_v24 = vpack.c.bf16 %v795_v23, %v793_v20  ;;  %v797_v26 = vpop.f32.mrb[34].mxu1  ;;  %p1774_p0 = pnand %p1773_p11, %p2002_p10  ;;  %s1778_s28 = scalar_lea.vmem %s1777_s10, 4096 }
 0x216   : > { %v689_v25 = vpop.f32.mrb[39].mxu0  ;;  %v799_v28 = vpop.f32.mrb[35].mxu1  ;;  %p1779_p9 = scmp.lt.s32.totalorder %s2251_s6, %s1777_s10  ;;  %p1780_p1 = scmp.lt.s32.totalorder %s1778_s28, %s1772_s26 }
 0x217   : > { %1058 = vst [vmem:[%s2163_s25 + $0x10] sm:$0xff] %v1549_v21  ;;  %v1550_v27 = vpack.c.bf16 %v689_v25, %v687_v22  ;;  %1194 = vst [vmem:[%s2147_s7 + $0x50] sm:$0xff] %v1571_v24  ;;  %v1572_v29 = vpack.c.bf16 %v799_v28, %v797_v26  ;;  %v693_v30 = vpop.f32.mrb[40].mxu0  ;;  %v803_v32 = vpop.f32.mrb[36].mxu1  ;;  %p1775_p5 = pneg %p1774_p0 }
 0x218   : > { %v695_v31 = vpop.f32.mrb[41].mxu0  ;;  %v805_v35 = vpop.f32.mrb[37].mxu1  ;;  %p1781_p2 = por %p1780_p1, %p1779_p9 }
 0x219   : > { %1059 = vst [vmem:[%s2163_s25 + $0x18] sm:$0xff] %v1550_v27  ;;  %1195 = vst [vmem:[%s2147_s7 + $0x58] sm:$0xff] %v1572_v29  ;;  %v1551_v33 = vpack.c.bf16 %v695_v31, %v693_v30  ;;  %v697_v34 = vpop.f32.mrb[42].mxu0  ;;  %v1573_v0 = vpack.c.bf16 %v805_v35, %v803_v32  ;;  %v807_v37 = vpop.f32.mrb[38].mxu1 }
 0x21a   : > { %v699_v36 = vpop.f32.mrb[43].mxu0  ;;  %v809_v39 = vpop.f32.mrb[39].mxu1  ;;  %p1782_p3 = pnand %p1781_p2, %p1775_p5 }
 0x21b   : > { %1060 = vst [vmem:[%s2163_s25 + $0x20] sm:$0xff] %v1551_v33  ;;  %v1552_v38 = vpack.c.bf16 %v699_v36, %v697_v34  ;;  %1196 = vst [vmem:[%s2147_s7 + $0x60] sm:$0xff] %v1573_v0  ;;  %v1574_v40 = vpack.c.bf16 %v809_v39, %v807_v37  ;;  %v703_v41 = vpop.f32.mrb[44].mxu0 }
 0x21c   : > { %v705_v42 = vpop.f32.mrb[45].mxu0  ;;  %v813_v43 = vpop.f32.mrb[40].mxu1 }
 0x21d   : > { %1061 = vst [vmem:[%s2163_s25 + $0x28] sm:$0xff] %v1552_v38  ;;  %1197 = vst [vmem:[%s2147_s7 + $0x68] sm:$0xff] %v1574_v40  ;;  %v1553_v44 = vpack.c.bf16 %v705_v42, %v703_v41  ;;  %v707_v45 = vpop.f32.mrb[46].mxu0  ;;  %v815_v46 = vpop.f32.mrb[41].mxu1 }
 0x21e   : > { %v1575_v47 = vpack.c.bf16 %v815_v46, %v813_v43  ;;  %v709_v48 = vpop.f32.mrb[47].mxu0  ;;  %v817_v49 = vpop.f32.mrb[42].mxu1 }
 0x21f   : > { %1062 = vst [vmem:[%s2163_s25 + $0x30] sm:$0xff] %v1553_v44  ;;  %v1554_v50 = vpack.c.bf16 %v709_v48, %v707_v45  ;;  %v819_v51 = vpop.f32.mrb[43].mxu1 }
 0x220   : > { %1201 = vst [vmem:[%s2147_s7 + $0x78] sm:$0xff] %v1575_v47  ;;  %v1576_v52 = vpack.c.bf16 %v819_v51, %v817_v49 }
 0x221   : > { %1063 = vst [vmem:[%s2163_s25 + $0x38] sm:$0xff] %v1554_v50 }
 0x222   : > { %1202 = vst [vmem:[%s2147_s7 + $0x80] sm:$0xff] %v1576_v52 }
 0x223   : > { %1785 = shalt.err (!%p1782_p3)
}
 0x224   : > { %s1786_s25 = scalar_lea.hbm %s2249_s27, 2048  ;;  %s1790_s11 = scalar_lea.hbm %s2312_s4, 4096 }
 0x225   : > { %p1787_p7 = scmp.ne.s32.totalorder %s2249_s27, %s1786_s25  ;;  %p1791_p6 = scmp.lt.u32.totalorder %s2249_s27, %s2312_s4 }
 0x226   : > { %p1792_p8 = scmp.lt.u32.totalorder %s1790_s11, %s1786_s25  ;;  %p1794_p11 = scmp.lt.u32.totalorder %s1786_s25, %s2249_s27 }
 0x227   : > { %p1788_p13 = pnand %p1787_p7, %p2002_p10 }
 0x228   : > { %p1793_p12 = por %p1792_p8, %p1791_p6 }
 0x229   : > { %p1789_p4 = pneg %p1788_p13 }
 0x22a   : > { %p1795_p0 = por %p1794_p11, %p1793_p12 }
 0x22c   : > { %p1796_p5 = pnand %p1795_p0, %p1789_p4 }
 0x22e   : > { %1799 = shalt.err (!%p1796_p5)
}
 0x22f   : > { %1593 = dma.vmem_to_hbm [thread:$0]  (%p2002_p10), %s2251_s6, 2048, %s2249_s27, %s1214_s30, %s1873_s16, %s1873_s16, %s1874_s24   ;;  %v823_v53 = vpop.f32.mrb[44].mxu1 }
 0x230   : > { %v825_v54 = vpop.f32.mrb[45].mxu1 }
 0x231   : > { %v1577_v55 = vpack.c.bf16 %v825_v54, %v823_v53  ;;  %v827_v56 = vpop.f32.mrb[46].mxu1 }
 0x232   : > { %v829_v57 = vpop.f32.mrb[47].mxu1 }
 0x233   : > { %1203 = vst [vmem:[%s2147_s7 + $0x88] sm:$0xff] %v1577_v55  ;;  %v1578_v58 = vpack.c.bf16 %v829_v57, %v827_v56 }
 0x235   : > { %1204 = vst [vmem:[%s2147_s7 + $0x90] sm:$0xff] %v1578_v58 }
 0x236 PF: > { %s1275_s13 = sand.u32 1, %s1842_s18   ;;  %p2331_p9 = scmp.ne.s32.totalorder %s2321_s29, 0 }
 0x237   : > { %p2332_p1 = scmp.ge.s32.totalorder %s1862_s23, 2  ;;  %s1276_s17 = scalar_lea.sflag [#allocation4], %s1275_s13 }
 0x239   : > { %p1605_p2 = pnand %p2332_p1, %p2331_p9 }
 0x23b   : > { %1833 = dma.done.wait (!%p1605_p2), %s1276_s17, 2048  }
 0x23c   : > { %1835 = vsyncadd (!%p1605_p2), %s1276_s17, 4294965248  ;;  %s1285_s16 = scalar_lea.sflag [#allocation9], %s1275_s13 }
 0x23d   : > { %1837 = dma.done.wait (!%p1605_p2), %s1285_s16, 2048  }
 0x23e   : > { %1839 = vsyncadd (!%p1605_p2), %s1285_s16, 4294965248  ;;  %s26_s23 = sadd.s32 1, %s1862_s23   ;;  %s2333_s18 = smov %s1846_s19 }
 0x23f   : > { %p23_p10 = scmp.ge.s32.totalorder %s26_s23, 4   ;;  %s2334_s19 = smov %s1850_s20 }
 0x240   : > { %s2335_s20 = smov %s2011_s15  ;;  %s2336_s21 = smov %s1858_s22 }
 0x241   : > { %s2337_s22 = smov %s2339_s9  ;;  %25 = sbr.rel (!%p23_p10) target bundleno = 9 (0x9), region = 110 }
 0x248   :  { %1302 = vsyncpa [#allocation3], 1 }
 0x249   :  { %1304 = vsyncpa [#allocation3 + $0x1], 1 }
 0x24a   :  { %1305 = vsyncpa [#allocation6], 1 }
 0x24b   :  { %1306 = vsyncpa [#allocation4], 1 }
 0x24c   :  { %1308 = vsyncpa [#allocation4 + $0x1], 1 }
 0x24d   :  { %1309 = vsyncpa [#allocation9], 1 }
 0x24e   :  { %1311 = vsyncpa [#allocation9 + $0x1], 1 }

</bundles_post_ra>
